<compile_context>
chip_gen: v7x
topology: tpu7x:2x2x1
jax: 0.10.0
libtpu: 0.0.40
codegen_flags: <defaults>
</compile_context>

<pallas_src>
import functools

import jax
import jax.numpy as jnp
from jax.experimental import pallas as pl
from jax.experimental.pallas import tpu as pltpu


def _round_up(v, m):
    return (v + m - 1) // m * m


# ---------------------------------------------------------------------------
# Kernels
# ---------------------------------------------------------------------------

def ffn_resident_kernel(x_ref, w1_ref, b1_ref, w2_ref, b2_ref, o_ref):
    """Both weight matrices resident in VMEM; single pass over d_ff."""
    xt = x_ref[...].astype(w1_ref.dtype)                      # cast on VPU
    h = jnp.dot(xt, w1_ref[...], preferred_element_type=jnp.float32)
    h = jnp.maximum(h + b1_ref[...], 0.0)                     # relu(w_1(x))
    # dropout: eval-mode identity
    o_ref[...] = (jnp.dot(h.astype(w2_ref.dtype), w2_ref[...],
                          preferred_element_type=jnp.float32)
                  + b2_ref[...]).astype(o_ref.dtype)


def ffn_stream_kernel(x_ref, w1_ref, b1_ref, w2_ref, b2_ref, o_ref, *scratch):
    """Weights streamed over a trailing d_ff ("arbitrary") grid axis.

    If a scratch ref is supplied it is the f32 accumulator (epilogue casts
    into o_ref); otherwise o_ref itself is f32 and serves as the resident
    accumulator (saves tm*dm_pad*4 B of VMEM and the epilogue copy).
    """
    acc_ref = scratch[0] if scratch else o_ref
    k = pl.program_id(1)

    @pl.when(k == 0)
    def _init():
        acc_ref[...] = jnp.zeros_like(acc_ref)

    xt = x_ref[...].astype(w1_ref.dtype)
    h = jnp.dot(xt, w1_ref[...], preferred_element_type=jnp.float32)
    h = jnp.maximum(h + b1_ref[...], 0.0)                     # relu; eval dropout
    acc_ref[...] += jnp.dot(h.astype(w2_ref.dtype), w2_ref[...],
                            preferred_element_type=jnp.float32)

    @pl.when(k == pl.num_programs(1) - 1)
    def _epilogue():
        if scratch:
            o_ref[...] = (acc_ref[...] + b2_ref[...]).astype(o_ref.dtype)
        else:
            o_ref[...] += b2_ref[...]


# ---------------------------------------------------------------------------
# Generation-aware configuration
# ---------------------------------------------------------------------------

def _vmem_bytes():
    try:
        return int(pltpu.get_tpu_info().vmem_capacity_bytes)
    except Exception:
        return 64 * 1024 * 1024          # conservative default (v7x per-TC)


def _choose_config(M, dm_pad, dff_pad, out_itemsize, budget):
    """Pick (resident_weights, row_tile, ff_tile) under a VMEM byte budget."""
    row_cap = _round_up(M, 8)

    def resident_bytes(tm):
        w = 2 * (2 * dm_pad * dff_pad) * 2        # w1+w2, bf16, double-buffered
        xb = 2 * tm * dm_pad * 4                  # f32 x tile, double-buffered
        ob = 2 * tm * dm_pad * out_itemsize
        hb = tm * dff_pad * 6                     # f32 h + bf16 copy
        bias = 4 * (dff_pad + dm_pad) * 4
        return w + xb + ob + hb + bias

    def stream_bytes(tm, tf):
        w = 2 * (2 * dm_pad * tf) * 2
        xb = 2 * tm * dm_pad * 4
        ob = 2 * tm * dm_pad * out_itemsize
        ab = tm * dm_pad * 4                      # accumulator (worst case)
        hb = tm * tf * 6
        bias = 4 * (tf + dm_pad) * 4
        return w + xb + ob + ab + hb + bias

    # Preferred: weights VMEM-resident (each weight byte fetched exactly once).
    tm_cands = sorted({min(t, row_cap) for t in (512, 256, 128)}
                      | ({row_cap} if row_cap <= 1024 else set()))
    best = None
    for tm in tm_cands:
        if resident_bytes(tm) > budget:
            continue
        key = (_round_up(M, tm), -tm)             # least row padding, then biggest
        if best is None or key < best[0]:
            best = (key, tm)
    if best is not None:
        return True, best[1], dff_pad

    # Fallback: stream d_ff tiles; maximize rows amortizing each weight fetch.
    tm_cands = sorted({min(t, row_cap) for t in (1024, 768, 512, 384, 256, 128)}
                      | ({row_cap} if row_cap <= 1024 else set()))
    best = None
    for tm in tm_cands:
        for tf in (2048, 1024, 512, 256, 128):
            if tf > dff_pad or dff_pad % tf != 0:
                continue
            if stream_bytes(tm, tf) > budget:
                continue
            eff = tm * M / _round_up(M, tm)       # effective rows per weight fetch
            key = (eff, tf, tm)
            if best is None or key > best[0]:
                best = (key, tm, tf)
    if best is not None:
        return False, best[1], best[2]
    return False, min(128, row_cap), 128          # last resort


# ---------------------------------------------------------------------------
# Parameter prep (one-time) and forward pass
# ---------------------------------------------------------------------------

def prepare_params(w1, b1, w2, b2, weight_dtype=jnp.bfloat16):
    """One-time weight prep: pad to lane multiples and cast for the MXU.

    w1: (d_model, d_ff), w2: (d_ff, d_model)  (pre-transposed vs nn.Linear).
    Call once at init; do NOT re-run per forward call.
    """
    d_model, d_ff = w1.shape
    dm_pad = _round_up(d_model, 128)
    dff_pad = _round_up(d_ff, 128)
    w1p = jnp.pad(w1, ((0, dm_pad - d_model), (0, dff_pad - d_ff))).astype(weight_dtype)
    w2p = jnp.pad(w2, ((0, dff_pad - d_ff), (0, dm_pad - d_model))).astype(weight_dtype)
    b1p = jnp.pad(b1, (0, dff_pad - d_ff)).reshape(1, dff_pad).astype(jnp.float32)
    b2p = jnp.pad(b2, (0, dm_pad - d_model)).reshape(1, dm_pad).astype(jnp.float32)
    return w1p, b1p, w2p, b2p


@jax.jit
def positionwise_feed_forward(x, w1p, b1p, w2p, b2p):
    """x: (batch, seq, d_model). Weights pre-padded/cast by prepare_params."""
    batch, seq, d_model = x.shape
    dm_pad, dff_pad = w1p.shape
    M = batch * seq
    out_dtype = x.dtype
    out_itemsize = jnp.dtype(out_dtype).itemsize

    phys_vmem = _vmem_bytes()
    budget = int(phys_vmem * 0.65)           # cap on estimated tile footprint
    vmem_limit = int(phys_vmem * 0.85)       # compiler scoped-VMEM limit

    resident, tm, tf = _choose_config(M, dm_pad, dff_pad, out_itemsize, budget)
    M_pad = _round_up(M, tm)
    n_row_tiles = M_pad // tm

    # Per-call input prep: only x is padded (kept f32; kernel casts to bf16).
    x2d = jnp.pad(x.reshape(M, d_model),
                  ((0, M_pad - M), (0, dm_pad - d_model)))

    weight_bytes = (w1p.size * w1p.dtype.itemsize
                    + w2p.size * w2p.dtype.itemsize)
    cost = pl.CostEstimate(
        flops=4 * M_pad * dm_pad * dff_pad,
        transcendentals=0,
        bytes_accessed=(x2d.size * x2d.dtype.itemsize
                        + weight_bytes * (1 if resident else n_row_tiles)
                        + b1p.size * 4 + b2p.size * 4
                        + M_pad * dm_pad * out_itemsize),
    )

    if resident:
        grid_spec = pltpu.PrefetchScalarGridSpec(
            num_scalar_prefetch=0,
            grid=(n_row_tiles,),
            in_specs=[
                pl.BlockSpec((tm, dm_pad), lambda i: (i, 0)),          # x rows
                pl.BlockSpec((dm_pad, dff_pad), lambda i: (0, 0)),     # w1 resident
                pl.BlockSpec((1, dff_pad), lambda i: (0, 0)),          # b1
                pl.BlockSpec((dff_pad, dm_pad), lambda i: (0, 0)),     # w2 resident
                pl.BlockSpec((1, dm_pad), lambda i: (0, 0)),           # b2
            ],
            out_specs=pl.BlockSpec((tm, dm_pad), lambda i: (i, 0)),
            scratch_shapes=[],
        )
        kernel = ffn_resident_kernel
        dim_sem = ("parallel",)
    else:
        acc_in_out = out_dtype == jnp.float32
        scratch = [] if acc_in_out else [pltpu.VMEM((tm, dm_pad), jnp.float32)]
        grid_spec = pltpu.PrefetchScalarGridSpec(
            num_scalar_prefetch=0,
            grid=(n_row_tiles, dff_pad // tf),    # d_ff reduction axis last
            in_specs=[
                pl.BlockSpec((tm, dm_pad), lambda i, k: (i, 0)),
                pl.BlockSpec((dm_pad, tf), lambda i, k: (0, k)),
                pl.BlockSpec((1, tf), lambda i, k: (0, k)),
                pl.BlockSpec((tf, dm_pad), lambda i, k: (k, 0)),
                pl.BlockSpec((1, dm_pad), lambda i, k: (0, 0)),
            ],
            out_specs=pl.BlockSpec((tm, dm_pad), lambda i, k: (i, 0)),
            scratch_shapes=scratch,
        )
        kernel = ffn_stream_kernel
        dim_sem = ("parallel", "arbitrary")

    out2d = pl.pallas_call(
        kernel,
        out_shape=jax.ShapeDtypeStruct((M_pad, dm_pad), out_dtype),
        grid_spec=grid_spec,
        compiler_params=pltpu.CompilerParams(
            dimension_semantics=dim_sem,
            vmem_limit_bytes=vmem_limit,
        ),
        cost_estimate=cost,
    )(x2d, w1p, b1p, w2p, b2p)

    return out2d[:M, :d_model].reshape(batch, seq, d_model)


def init_params(key, d_model, d_ff, dtype=jnp.float32):
    """Deterministic init mimicking nn.Linear default (uniform ±1/sqrt(fan_in))."""
    k1, k2, k3, k4 = jax.random.split(key, 4)
    bound1 = 1.0 / (d_model ** 0.5)
    bound2 = 1.0 / (d_ff ** 0.5)
    # stored pre-transposed: (in, out)
    w1 = jax.random.uniform(k1, (d_model, d_ff), dtype, -bound1, bound1)
    b1 = jax.random.uniform(k2, (d_ff,), dtype, -bound1, bound1)
    w2 = jax.random.uniform(k3, (d_ff, d_model), dtype, -bound2, bound2)
    b2 = jax.random.uniform(k4, (d_model,), dtype, -bound2, bound2)
    return w1, b1, w2, b2


if __name__ == "__main__":
    key = jax.random.PRNGKey(0)
    kx, kp = jax.random.split(key)

    batch, seq, d_model, d_ff = 2, 8, 32, 64
    x = jax.random.normal(kx, (batch, seq, d_model), jnp.float32)
    w1, b1, w2, b2 = init_params(kp, d_model, d_ff)

    # One-time weight prep (pad + bf16 cast) hoisted out of the forward call.
    params = prepare_params(w1, b1, w2, b2)

    y = positionwise_feed_forward(x, *params)
    y = jax.block_until_ready(y)

    # Reference in plain JAX f32 (eval-mode dropout == identity).
    # Tolerance loosened: kernel uses bf16 MXU operands with f32 accumulation.
    ref = jnp.maximum(x @ w1 + b1, 0.0) @ w2 + b2
    assert y.shape == (batch, seq, d_model)
    assert jnp.allclose(y, ref, atol=5e-2, rtol=5e-2), (
        float(jnp.max(jnp.abs(y - ref))))

    print("KERNEL_OK")
</pallas_src>

<mosaic_0001>
module attributes {stable_mosaic.version = 11 : i64} {
  func.func @ffn_resident_kernel(%arg0: i32, %arg1: memref<16x128xf32, #tpu.memory_space<vmem>>, %arg2: memref<128x128xbf16, #tpu.memory_space<vmem>>, %arg3: memref<1x128xf32, #tpu.memory_space<vmem>>, %arg4: memref<128x128xbf16, #tpu.memory_space<vmem>>, %arg5: memref<1x128xf32, #tpu.memory_space<vmem>>, %arg6: memref<16x128xf32, #tpu.memory_space<vmem>>) attributes {dimension_semantics = [#tpu.dimension_semantics<parallel>], iteration_bounds = array<i64: 1>, scalar_prefetch = 0 : i64, scratch_operands = 0 : i64, tpu.core_type = #tpu.core_type<tc>, window_params = [{transform_indices = @transform_0, window_bounds = array<i64: 16, 128>}, {pipeline_mode = #tpu.pipeline_mode<synchronous>, transform_indices = @transform_1, window_bounds = array<i64: 128, 128>}, {pipeline_mode = #tpu.pipeline_mode<synchronous>, transform_indices = @transform_2, window_bounds = array<i64: 1, 128>}, {pipeline_mode = #tpu.pipeline_mode<synchronous>, transform_indices = @transform_3, window_bounds = array<i64: 128, 128>}, {pipeline_mode = #tpu.pipeline_mode<synchronous>, transform_indices = @transform_4, window_bounds = array<i64: 1, 128>}, {transform_indices = @transform_5, window_bounds = array<i64: 16, 128>}]} {
    %c0 = arith.constant 0 : index
    %c0_0 = arith.constant 0 : index
    %0 = vector.load %arg1[%c0, %c0_0] : memref<16x128xf32, #tpu.memory_space<vmem>>, vector<16x128xf32>
    %1 = arith.truncf %0 : vector<16x128xf32> to vector<16x128xbf16>
    %c0_1 = arith.constant 0 : index
    %c0_2 = arith.constant 0 : index
    %2 = vector.load %arg2[%c0_1, %c0_2] : memref<128x128xbf16, #tpu.memory_space<vmem>>, vector<128x128xbf16>
    %cst = arith.constant dense<0.000000e+00> : vector<16x128xf32>
    %3 = tpu.matmul %1, %2, %cst {dimension_numbers = #tpu.dot_dimension_numbers<[1], [0], [0], [1], [0, 0, 1, 1], [], []>} : vector<16x128xbf16>, vector<128x128xbf16>, vector<16x128xf32> -> vector<16x128xf32>
    %c0_3 = arith.constant 0 : index
    %c0_4 = arith.constant 0 : index
    %4 = vector.load %arg3[%c0_3, %c0_4] : memref<1x128xf32, #tpu.memory_space<vmem>>, vector<1x128xf32>
    %5 = vector.broadcast %4 : vector<1x128xf32> to vector<16x128xf32>
    %6 = arith.addf %3, %5 : vector<16x128xf32>
    %cst_5 = arith.constant 0.000000e+00 : f32
    %7 = vector.broadcast %cst_5 : f32 to vector<16x128xf32>
    %8 = arith.maximumf %6, %7 : vector<16x128xf32>
    %9 = arith.truncf %8 : vector<16x128xf32> to vector<16x128xbf16>
    %c0_6 = arith.constant 0 : index
    %c0_7 = arith.constant 0 : index
    %10 = vector.load %arg4[%c0_6, %c0_7] : memref<128x128xbf16, #tpu.memory_space<vmem>>, vector<128x128xbf16>
    %cst_8 = arith.constant dense<0.000000e+00> : vector<16x128xf32>
    %11 = tpu.matmul %9, %10, %cst_8 {dimension_numbers = #tpu.dot_dimension_numbers<[1], [0], [0], [1], [0, 0, 1, 1], [], []>} : vector<16x128xbf16>, vector<128x128xbf16>, vector<16x128xf32> -> vector<16x128xf32>
    %c0_9 = arith.constant 0 : index
    %c0_10 = arith.constant 0 : index
    %12 = vector.load %arg5[%c0_9, %c0_10] : memref<1x128xf32, #tpu.memory_space<vmem>>, vector<1x128xf32>
    %13 = vector.broadcast %12 : vector<1x128xf32> to vector<16x128xf32>
    %14 = arith.addf %11, %13 : vector<16x128xf32>
    %c0_11 = arith.constant 0 : index
    %c0_12 = arith.constant 0 : index
    %15 = vector.load %arg6[%c0_11, %c0_12] : memref<16x128xf32, #tpu.memory_space<vmem>>, vector<16x128xf32>
    tpu.vector_store %arg6[%c0_11, %c0_12], %14 {strides = array<i32>} : memref<16x128xf32, #tpu.memory_space<vmem>>, vector<16x128xf32>,
    return
  }
  func.func @transform_0(%arg0: i32) -> (i32, i32) {
    %c0_i32 = arith.constant 0 : i32
    %c0_i32_0 = arith.constant 0 : i32
    return %arg0, %c0_i32 : i32, i32
  }
  func.func @transform_1(%arg0: i32) -> (i32, i32) {
    %c0_i32 = arith.constant 0 : i32
    %c0_i32_0 = arith.constant 0 : i32
    %c0_i32_1 = arith.constant 0 : i32
    return %c0_i32, %c0_i32_0 : i32, i32
  }
  func.func @transform_2(%arg0: i32) -> (i32, i32) {
    %c0_i32 = arith.constant 0 : i32
    %c0_i32_0 = arith.constant 0 : i32
    %c0_i32_1 = arith.constant 0 : i32
    return %c0_i32, %c0_i32_0 : i32, i32
  }
  func.func @transform_3(%arg0: i32) -> (i32, i32) {
    %c0_i32 = arith.constant 0 : i32
    %c0_i32_0 = arith.constant 0 : i32
    %c0_i32_1 = arith.constant 0 : i32
    return %c0_i32, %c0_i32_0 : i32, i32
  }
  func.func @transform_4(%arg0: i32) -> (i32, i32) {
    %c0_i32 = arith.constant 0 : i32
    %c0_i32_0 = arith.constant 0 : i32
    %c0_i32_1 = arith.constant 0 : i32
    return %c0_i32, %c0_i32_0 : i32, i32
  }
  func.func @transform_5(%arg0: i32) -> (i32, i32) {
    %c0_i32 = arith.constant 0 : i32
    %c0_i32_0 = arith.constant 0 : i32
    return %arg0, %c0_i32 : i32, i32
  }
}

</mosaic_0001>

<bundles_post_ra>
// kernel: positionwise_feed_forward.1
= control target key start
LH: loop header
LB: loop body
LE: loop exit
PB: predicated region body
PF: predicated region fallthrough
CT: control target
= control target key end

     0   :  { %10 = vsyncpa [#allocation3], 0  ;;  %s511_s0 = inlined_call_operand.vmem [shape: f32[16,128], index: 0, kind: input, shape index: {}]   ;;  %s512_s1 = inlined_call_operand.hbm [shape: bf16[128,128], index: 1, kind: input, shape index: {}]   ;;  %s513_s2 = inlined_call_operand.vmem [shape: f32[1,128], index: 2, kind: input, shape index: {}]   ;;  %s514_s3 = inlined_call_operand.hbm [shape: bf16[128,128], index: 3, kind: input, shape index: {}]   ;;  %s515_s4 = inlined_call_operand.vmem [shape: f32[1,128], index: 4, kind: input, shape index: {}]   ;;  %s516_s5 = inlined_call_operand.vmem [shape: f32[16,128], index: 5, kind: output, shape index: {}]  }
   0x1   :  { %11 = vsyncpa [#allocation5], 0  ;;  %s433_s18 = smov [#allocation2]   ;;  %s385_s22 = scalar_lea.hbm %s512_s1, 1024 }
   0x2   :  { %s19_s19 = sshll.u32 %s433_s18, 4  ;;  %p386_p0 = scmp.ne.s32.totalorder %s512_s1, %s385_s22  ;;  %s20_s19 = int_to_ptr.vmem [resolvable:$true] %s19_s19 }
   0x3   :  { %p389_p1 = scmp.lt.u32.totalorder %s385_s22, %s512_s1 }
   0x5   :  { %p391_p2 = pnand %p389_p1, %p386_p0 }
   0x7   :  { %394 = shalt.err (!%p391_p2)
}
   0x8   :  { %s395_s27 = scalar_lea.vmem %s20_s19, 1024  ;;  %p400_p4 = scmp.lt.s32.totalorder %s20_s19, %s20_s19 }
   0x9   :  { %p396_p3 = scmp.ne.s32.totalorder %s20_s19, %s395_s27  ;;  %p401_p5 = scmp.lt.s32.totalorder %s395_s27, %s395_s27 }
   0xb   :  { %p402_p6 = por %p401_p5, %p400_p4 }
   0xd   :  { %p403_p7 = pnand %p402_p6, %p396_p3 }
   0xf   :  { %406 = shalt.err (!%p403_p7)
}
  0x10   :  { %s434_s28 = smov 64   ;;  %s435_s29 = smov 4  }
  0x11   :  { %25 = dma.hbm_to_vmem [thread:$0]  %s512_s1, 1024, %s20_s19, [#allocation3], %s434_s28, %s434_s28, %s435_s29  }
  0x12   :  { %s436_s7 = smov [#allocation4]   ;;  %s407_s11 = scalar_lea.hbm %s514_s3, 1024 }
  0x13   :  { %s33_s8 = sshll.u32 %s436_s7, 4  ;;  %p408_p8 = scmp.ne.s32.totalorder %s514_s3, %s407_s11  ;;  %s34_s8 = int_to_ptr.vmem [resolvable:$true] %s33_s8 }
  0x14   :  { %p411_p9 = scmp.lt.u32.totalorder %s407_s11, %s514_s3 }
  0x16   :  { %p413_p10 = pnand %p411_p9, %p408_p8 }
  0x18   :  { %416 = shalt.err (!%p413_p10)
}
  0x19   :  { %s417_s16 = scalar_lea.vmem %s34_s8, 1024  ;;  %p422_p12 = scmp.lt.s32.totalorder %s34_s8, %s34_s8 }
  0x1a   :  { %p418_p11 = scmp.ne.s32.totalorder %s34_s8, %s417_s16  ;;  %p423_p13 = scmp.lt.s32.totalorder %s417_s16, %s417_s16 }
  0x1c   :  { %p424_p0 = por %p423_p13, %p422_p12 }
  0x1e   :  { %p425_p1 = pnand %p424_p0, %p418_p11 }
  0x20   :  { %428 = shalt.err (!%p425_p1)
}
  0x21   :  { %39 = dma.hbm_to_vmem [thread:$0]  %s514_s3, 1024, %s34_s8, [#allocation5], %s434_s28, %s434_s28, %s435_s29  }
  0x22   :  { %429 = dma.done.wait [#allocation3], 1024  }
  0x23   :  { %430 = vsyncadd [#allocation3], 4294966272 }
  0x24   :  { %431 = dma.done.wait [#allocation5], 1024  }
  0x25   :  { %432 = vsyncadd [#allocation5], 4294966272  ;;  %v437_v0 = vmov 0.0   ;;  %vm438_vm0 = vmmov 0   ;;  %v369_v1 = vld [vmem:[#allocation2] sm:$0xff]   ;;  %v370_v2 = vld [vmem:[#allocation2 + $0x8] sm:$0xff]  }
  0x26   :  { %323 = vmatprep.subr.bf16.mxu0 %v437_v0  ;;  %339 = vmatprep.mubr.msk.bf16.mxu0 %vm438_vm0, %v437_v0  ;;  %v371_v3 = vld [vmem:[#allocation2 + $0x10] sm:$0xff]   ;;  %v377_v4 = vld [vmem:[#allocation4] sm:$0xff]   ;;  %v372_v5 = vld [vmem:[#allocation2 + $0x18] sm:$0xff]  }
  0x27   :  { %343 = vmatprep.subr.bf16.mxu1 %v437_v0  ;;  %359 = vmatprep.mubr.msk.bf16.mxu1 %vm438_vm0, %v437_v0  ;;  %v378_v6 = vld [vmem:[#allocation4 + $0x8] sm:$0xff]   ;;  %v373_v7 = vld [vmem:[#allocation2 + $0x20] sm:$0xff]   ;;  %v379_v8 = vld [vmem:[#allocation4 + $0x10] sm:$0xff]  }
  0x28   :  { %324 = vmatpush3.bf16.msra.mxu0 %v369_v1  ;;  %344 = vmatpush3.bf16.msra.mxu1 %v377_v4  ;;  %v374_v9 = vld [vmem:[#allocation2 + $0x28] sm:$0xff]   ;;  %v380_v10 = vld [vmem:[#allocation4 + $0x18] sm:$0xff]   ;;  %v375_v11 = vld [vmem:[#allocation2 + $0x30] sm:$0xff]  }
  0x29   :  { %325 = vmatprep.subr.bf16.mxu0 %v437_v0  ;;  %345 = vmatprep.subr.bf16.mxu1 %v437_v0  ;;  %v381_v12 = vld [vmem:[#allocation4 + $0x20] sm:$0xff]   ;;  %v376_v13 = vld [vmem:[#allocation2 + $0x38] sm:$0xff]   ;;  %v50_v15 = vld [vmem:[%s511_s0 + $0x8] sm:$0xff] }
  0x2a   :  { %v49_v14 = vld [vmem:[%s511_s0] sm:$0xff]  ;;  %v382_v16 = vld [vmem:[#allocation4 + $0x28] sm:$0xff]   ;;  %v383_v18 = vld [vmem:[#allocation4 + $0x30] sm:$0xff]  }
  0x2b   :  { %v51_v17 = vpack.c.bf16 %v50_v15, %v49_v14  ;;  %v384_v19 = vld [vmem:[#allocation4 + $0x38] sm:$0xff]   ;;  %v287_v20 = vld [vmem:[%s513_s2] ss:$0 sm:$0xff] }
  0x2c   :  { %326 = vmatpush3.bf16.msra.mxu0 %v370_v2  ;;  %346 = vmatpush3.bf16.msra.mxu1 %v378_v6  ;;  %v296_v30 = vld [vmem:[%s515_s4] ss:$0 sm:$0xff] }
  0x2d   :  { %327 = vmatprep.subr.bf16.mxu0 %v437_v0  ;;  %347 = vmatprep.subr.bf16.mxu1 %v437_v0 }
  0x30   :  { %328 = vmatpush3.bf16.msra.mxu0 %v371_v3  ;;  %348 = vmatpush3.bf16.msra.mxu1 %v379_v8 }
  0x31   :  { %329 = vmatprep.subr.bf16.mxu0 %v437_v0  ;;  %349 = vmatprep.subr.bf16.mxu1 %v437_v0 }
  0x34   :  { %330 = vmatpush3.bf16.msra.mxu0 %v372_v5  ;;  %350 = vmatpush3.bf16.msra.mxu1 %v380_v10 }
  0x35   :  { %331 = vmatprep.subr.bf16.mxu0 %v437_v0  ;;  %351 = vmatprep.subr.bf16.mxu1 %v437_v0 }
  0x38   :  { %332 = vmatpush3.bf16.msra.mxu0 %v373_v7  ;;  %352 = vmatpush3.bf16.msra.mxu1 %v381_v12 }
  0x39   :  { %333 = vmatprep.subr.bf16.mxu0 %v437_v0  ;;  %353 = vmatprep.subr.bf16.mxu1 %v437_v0 }
  0x3c   :  { %334 = vmatpush3.bf16.msra.mxu0 %v374_v9  ;;  %354 = vmatpush3.bf16.msra.mxu1 %v382_v16 }
  0x3d   :  { %335 = vmatprep.subr.bf16.mxu0 %v437_v0  ;;  %355 = vmatprep.subr.bf16.mxu1 %v437_v0 }
  0x40   :  { %336 = vmatpush3.bf16.msra.mxu0 %v375_v11  ;;  %356 = vmatpush3.bf16.msra.mxu1 %v383_v18 }
  0x41   :  { %337 = vmatprep.subr.bf16.mxu0 %v437_v0  ;;  %357 = vmatprep.subr.bf16.mxu1 %v437_v0 }
  0x44   :  { %338 = vmatpush3.bf16.msra.mxu0 %v376_v13  ;;  %358 = vmatpush3.bf16.msra.mxu1 %v384_v19 }
  0x47   :  { %340 = vmatmul.mubr.bf16.vlgmr.msra.gmra.mrb[0].mxu0 %v51_v17 }
 0x11a   :  { %v157_v21 = vpop.f32.mrb[0].mxu0 }
 0x11b   :  { %v158_v22 = vadd.f32 %v287_v20, %v157_v21  ;;  %v341_v23 = vpop.f32.mrb[1].mxu0 }
 0x11c   :  { %v160_v24 = vpop.f32.mrb[2].mxu0 }
 0x11d   :  { %v161_v25 = vadd.f32 %v287_v20, %v160_v24  ;;  %v342_v26 = vpop.f32.mrb[3].mxu0  ;;  %v164_v27 = vmax.f32 %v158_v22, 0.0 }
 0x11f   :  { %v165_v28 = vmax.f32 %v161_v25, 0.0 }
 0x121   :  { %v166_v29 = vpack.c.bf16 %v165_v28, %v164_v27 }
 0x123   :  { %360 = vmatmul.mubr.bf16.vlgmr.msra.gmra.mrb[0].mxu1 %v166_v29 }
 0x1f6   :  { %v272_v31 = vpop.f32.mrb[0].mxu1 }
 0x1f7   :  { %v273_v32 = vadd.f32 %v296_v30, %v272_v31  ;;  %v361_v33 = vpop.f32.mrb[1].mxu1 }
 0x1f8   :  { %v275_v34 = vpop.f32.mrb[2].mxu1 }
 0x1f9   :  { %279 = vst [vmem:[%s516_s5] sm:$0xff] %v273_v32  ;;  %v276_v35 = vadd.f32 %v296_v30, %v275_v34  ;;  %v362_v36 = vpop.f32.mrb[3].mxu1 }
 0x1fb   :  { %280 = vst [vmem:[%s516_s5 + $0x8] sm:$0xff] %v276_v35 }
 0x1fc   :  { %285 = vsyncpa [#allocation3], 1 }
 0x1fd   :  { %286 = vsyncpa [#allocation5], 1 }

</bundles_post_ra>
